<compile_context>
chip_gen: v7x
topology: tpu7x:2x2x1
jax: 0.10.0
libtpu: 0.0.40
codegen_flags: <defaults>
</compile_context>

<pallas_src>
import jax
import jax.numpy as jnp
from jax import lax
from jax.experimental import pallas as pl
from jax.experimental.pallas import tpu as pltpu

PAD = 0


def _round_up(n, m):
    return (n + m - 1) // m * m


def _pad_to(a, shape):
    out = jnp.zeros(shape, a.dtype)
    return out.at[tuple(slice(0, s) for s in a.shape)].set(a)


def vrnn_decoder_step_kernel(mask_ref, emb_ref, h0_ref, zb_ref, wie_ref,
                             wh_ref, bhn_ref, wlh_ref, wle_ref, bl_ref,
                             out_ref, h_ref):
    """One GRU time step + its output projection.

    Grid axis 0 = T (serial).  Per-step blocks:
      mask_ref : (1, Bp, 1)   int32, 1 where token == PAD (padded rows = 1)
      emb_ref  : (1, Bp, Ep)  embedding slab for step t (time-major)
      out_ref  : (1, Bp, Ep)  logits for step t (lane-dense, Ep = 128k)
    Resident (constant block index) inputs:
      h0_ref   : (Bp, Hp)     initial hidden state
      zb_ref   : (Bp, 3Hp)    z @ W_il + [br|bz|bin]  (z constant over time)
      wie_ref  : (Ep, 3Hp)    fused, 128-lane padded input gate weights [r|z|n]
      wh_ref   : (Hp, 3Hp)    fused, 128-lane padded hidden gate weights
      bhn_ref  : (1, Hp)      hidden-side bias of the n gate
      wlh_ref  : (Hp, Ep)     hidden half of linear_logit
      wle_ref  : (Ep, Ep)     embedding half of linear_logit
      bl_ref   : (1, Ep)      linear_logit bias
    Scratch:
      h_ref    : (Bp, Hp)     recurrent state, persists across grid steps
    """
    Hp = h_ref.shape[1]

    @pl.when(pl.program_id(0) == 0)
    def _():
        h_ref[...] = h0_ref[...]

    emb = emb_ref[0]                      # (Bp, Ep)
    pad = mask_ref[0] > 0                 # (Bp, 1) bool
    h = h_ref[...]                        # (Bp, Hp)

    # Time-parallel input projection for this step (off the h dependency,
    # overlaps the pipeline's DMA of the next step's emb block).
    xp = jnp.dot(emb, wie_ref[...],
                 preferred_element_type=jnp.float32) + zb_ref[...]   # (Bp, 3Hp)
    # The only matmul on the serial h -> h_new critical path.
    hh = jnp.dot(h, wh_ref[...], preferred_element_type=jnp.float32)  # (Bp, 3Hp)

    # sigmoid(x) = 0.5*tanh(0.5*x) + 0.5  (one EUP op per gate).
    # Gate slices are 128-lane aligned because each gate block is Hp wide.
    r = 0.5 * jnp.tanh(0.5 * (xp[:, 0:Hp] + hh[:, 0:Hp])) + 0.5
    zg = 0.5 * jnp.tanh(0.5 * (xp[:, Hp:2 * Hp] + hh[:, Hp:2 * Hp])) + 0.5
    n = jnp.tanh(xp[:, 2 * Hp:3 * Hp] + r * (hh[:, 2 * Hp:3 * Hp] + bhn_ref[...]))
    h_new = (1.0 - zg) * n + zg * h

    # pack/pad semantics: recurrent state freezes across PAD positions,
    # emitted hidden is zero there (padded batch rows are PAD too).
    h_ref[...] = jnp.where(pad, h, h_new)
    h_out = jnp.where(pad, 0.0, h_new)

    # Per-step output projection + tanh; lane-dense (Bp, Ep) store.
    logits = jnp.tanh(
        jnp.dot(h_out, wlh_ref[...], preferred_element_type=jnp.float32)
        + jnp.dot(emb, wle_ref[...], preferred_element_type=jnp.float32)
        + bl_ref[...])
    out_ref[0] = logits.astype(out_ref.dtype)


def vrnn_decoder_forward(x, z, params, hidden=None):
    """x: (B, T) int32 token ids, z: (B, latent_size) float32.

    Returns logits: (B, T, input_size) float32 (batch-first, like PyTorch).
    """
    emb_table = params["emb_table"]            # (n_words, E), PAD row zeroed
    B, T = x.shape
    E = emb_table.shape[1]
    H = params["whr"].shape[0]
    L = z.shape[1]

    Bp = _round_up(B, 8)        # 8-sublane row blocks
    Hp = _round_up(H, 128)      # 128-lane gate blocks
    Ep = _round_up(E, 128)      # lane-dense output

    # ---- fused, padded weight layouts: columns ordered [r | z | n] blocks ----
    def fuse_cols(wr, wz, wn, rows, rows_p):
        w = jnp.zeros((rows_p, 3 * Hp), jnp.float32)
        w = w.at[:rows, 0:H].set(wr)
        w = w.at[:rows, Hp:Hp + H].set(wz)
        w = w.at[:rows, 2 * Hp:2 * Hp + H].set(wn)
        return w

    wie_p = fuse_cols(params["wir"][:E], params["wiz"][:E], params["win"][:E], E, Ep)
    wil_p = fuse_cols(params["wir"][E:], params["wiz"][E:], params["win"][E:], L, L)
    bi_p = jnp.zeros((1, 3 * Hp), jnp.float32)
    bi_p = bi_p.at[:, 0:H].set(params["br"])
    bi_p = bi_p.at[:, Hp:Hp + H].set(params["bz"])
    bi_p = bi_p.at[:, 2 * Hp:2 * Hp + H].set(params["bin"])

    wh_p = fuse_cols(params["whr"], params["whz"], params["whn"], H, Hp)
    bhn_p = _pad_to(params["bhn"], (1, Hp))
    wlh_p = _pad_to(params["wlh"], (Hp, Ep))
    wle_p = _pad_to(params["wle"], (Ep, Ep))
    bl_p = _pad_to(params["bl"], (1, Ep))

    # ---- time-major gather (no big-tensor transpose) + cheap padding ----
    x_tm = x.T                                            # (T, B)
    emb_tm = jnp.take(emb_table, x_tm, axis=0)            # (T, B, E)
    emb_tm_p = _pad_to(emb_tm, (T, Bp, Ep))               # (T, Bp, Ep)

    # PAD mask as a (T, Bp, 1) int32 column; padded batch rows marked PAD.
    mask_tm = jnp.ones((T, Bp), jnp.int32)
    mask_tm = mask_tm.at[:, :B].set((x_tm == PAD).astype(jnp.int32))
    mask_tm_p = mask_tm.reshape(T, Bp, 1)

    # z is constant over time: fold z @ W_il + gate biases into a per-batch bias.
    z_p = _pad_to(z.astype(jnp.float32), (Bp, L))
    zb_p = jnp.dot(z_p, wil_p) + bi_p                      # (Bp, 3Hp)

    h0 = jnp.zeros((B, H), jnp.float32) if hidden is None else hidden
    h0_p = _pad_to(h0.astype(jnp.float32), (Bp, Hp))

    grid_spec = pltpu.PrefetchScalarGridSpec(
        num_scalar_prefetch=0,
        grid=(T,),
        in_specs=[
            pl.BlockSpec((1, Bp, 1), lambda t: (t, 0, 0)),      # mask_t
            pl.BlockSpec((1, Bp, Ep), lambda t: (t, 0, 0)),     # emb_t
            pl.BlockSpec((Bp, Hp), lambda t: (0, 0)),           # h0
            pl.BlockSpec((Bp, 3 * Hp), lambda t: (0, 0)),       # zb
            pl.BlockSpec((Ep, 3 * Hp), lambda t: (0, 0)),       # wie
            pl.BlockSpec((Hp, 3 * Hp), lambda t: (0, 0)),       # wh
            pl.BlockSpec((1, Hp), lambda t: (0, 0)),            # bhn
            pl.BlockSpec((Hp, Ep), lambda t: (0, 0)),           # wlh
            pl.BlockSpec((Ep, Ep), lambda t: (0, 0)),           # wle
            pl.BlockSpec((1, Ep), lambda t: (0, 0)),            # bl
        ],
        out_specs=pl.BlockSpec((1, Bp, Ep), lambda t: (t, 0, 0)),
        scratch_shapes=[pltpu.VMEM((Bp, Hp), jnp.float32)],     # recurrent h
    )

    logits_tm_p = pl.pallas_call(
        vrnn_decoder_step_kernel,
        out_shape=jax.ShapeDtypeStruct((T, Bp, Ep), jnp.float32),
        grid_spec=grid_spec,
        compiler_params=pltpu.CompilerParams(
            dimension_semantics=("arbitrary",),      # serial recurrence over T
            vmem_limit_bytes=32 * 1024 * 1024),
    )(mask_tm_p, emb_tm_p, h0_p, zb_p, wie_p, wh_p, bhn_p, wlh_p, wle_p, bl_p)

    # strip padding, back to batch-first
    return jnp.transpose(logits_tm_p[:, :B, :E], (1, 0, 2))     # (B, T, E)


def reference_forward(x, z, params, hidden=None):
    """Pure-JAX reference of the same semantics, for a sanity check."""
    emb_table = params["emb_table"]
    B, T = x.shape
    H = params["whr"].shape[0]
    mask = (x == PAD).astype(jnp.float32)
    emb = jnp.take(emb_table, x, axis=0)
    z_rep = jnp.broadcast_to(z[:, None, :], (B, T, z.shape[-1]))
    inp = jnp.concatenate([emb, z_rep], axis=-1)
    h = jnp.zeros((B, H), jnp.float32) if hidden is None else hidden

    def step(h, t_in):
        x_t, e_t, m_t = t_in
        m_t = m_t[:, None]
        r = jax.nn.sigmoid(x_t @ params["wir"] + h @ params["whr"] + params["br"])
        zg = jax.nn.sigmoid(x_t @ params["wiz"] + h @ params["whz"] + params["bz"])
        n = jnp.tanh(x_t @ params["win"] + params["bin"]
                     + r * (h @ params["whn"] + params["bhn"]))
        h_new = (1.0 - zg) * n + zg * h
        out_h = (1.0 - m_t) * h_new
        logits_t = jnp.tanh(out_h @ params["wlh"] + e_t @ params["wle"] + params["bl"])
        return m_t * h + (1.0 - m_t) * h_new, logits_t

    _, logits_tm = lax.scan(
        step, h,
        (jnp.transpose(inp, (1, 0, 2)),
         jnp.transpose(emb, (1, 0, 2)),
         jnp.transpose(mask, (1, 0))))
    return jnp.transpose(logits_tm, (1, 0, 2))


def make_params(key, n_words, input_size, hidden_size, latent_size):
    """Deterministic synthetic parameters (shapes from VRNNDecoder.__init__)."""
    E, H, L = input_size, hidden_size, latent_size
    Din = E + L
    ks = jax.random.split(key, 12)
    u = lambda k, shape, s=0.1: jax.random.uniform(k, shape, jnp.float32, -s, s)

    emb_table = u(ks[0], (n_words, E))
    emb_table = emb_table.at[PAD].set(0.0)     # nn.Embedding padding_idx=PAD

    params = dict(
        emb_table=emb_table,
        # GRU input weights (PyTorch W_ih = [r; z; n] rows), stored transposed
        wir=u(ks[1], (Din, H)), wiz=u(ks[2], (Din, H)), win=u(ks[3], (Din, H)),
        # GRU hidden weights
        whr=u(ks[4], (H, H)), whz=u(ks[5], (H, H)), whn=u(ks[6], (H, H)),
        # biases: r,z gates combine b_ih + b_hh; n gate keeps them separate
        br=u(ks[7], (1, H)), bz=u(ks[8], (1, H)),
        bin=u(ks[9], (1, H)), bhn=u(ks[10], (1, H)),
    )
    ks2 = jax.random.split(ks[11], 3)
    # linear_logit: (H + E) -> E, concat split into two matmuls
    params["wlh"] = u(ks2[0], (H, E))
    params["wle"] = u(ks2[1], (E, E))
    params["bl"] = u(ks2[2], (1, E))
    return params


if __name__ == "__main__":
    n_words, input_size, hidden_size, latent_size = 50, 32, 32, 16
    B, T = 2, 8

    key = jax.random.PRNGKey(0)
    k_p, k_x, k_z = jax.random.split(key, 3)
    params = make_params(k_p, n_words, input_size, hidden_size, latent_size)

    # token ids in [1, n_words), with trailing PAD tokens to exercise the mask
    x = jax.random.randint(k_x, (B, T), 1, n_words, dtype=jnp.int32)
    x = x.at[0, 6:].set(PAD)
    x = x.at[1, 4:].set(PAD)
    z = jax.random.normal(k_z, (B, latent_size), jnp.float32)

    logits = vrnn_decoder_forward(x, z, params)
    logits = jax.block_until_ready(logits)

    ref = jax.block_until_ready(reference_forward(x, z, params))
    assert logits.shape == (B, T, input_size)
    assert jnp.allclose(logits, ref, atol=1e-4, rtol=1e-4)

    print("KERNEL_OK")
</pallas_src>

<mosaic_0001>
module attributes {stable_mosaic.version = 11 : i64} {
  func.func @vrnn_decoder_step_kernel(%arg0: i32, %arg1: memref<1x8x1xi32, #tpu.memory_space<vmem>>, %arg2: memref<1x8x128xf32, #tpu.memory_space<vmem>>, %arg3: memref<8x128xf32, #tpu.memory_space<vmem>>, %arg4: memref<8x384xf32, #tpu.memory_space<vmem>>, %arg5: memref<128x384xf32, #tpu.memory_space<vmem>>, %arg6: memref<128x384xf32, #tpu.memory_space<vmem>>, %arg7: memref<1x128xf32, #tpu.memory_space<vmem>>, %arg8: memref<128x128xf32, #tpu.memory_space<vmem>>, %arg9: memref<128x128xf32, #tpu.memory_space<vmem>>, %arg10: memref<1x128xf32, #tpu.memory_space<vmem>>, %arg11: memref<1x8x128xf32, #tpu.memory_space<vmem>>, %arg12: memref<8x128xf32, #tpu.memory_space<vmem>>) attributes {dimension_semantics = [#tpu.dimension_semantics<arbitrary>], iteration_bounds = array<i64: 8>, scalar_prefetch = 0 : i64, scratch_operands = 1 : i64, tpu.core_type = #tpu.core_type<tc>, window_params = [{transform_indices = @transform_0, window_bounds = array<i64: 1, 8, 1>}, {transform_indices = @transform_1, window_bounds = array<i64: 1, 8, 128>}, {pipeline_mode = #tpu.pipeline_mode<synchronous>, transform_indices = @transform_2, window_bounds = array<i64: 8, 128>}, {pipeline_mode = #tpu.pipeline_mode<synchronous>, transform_indices = @transform_3, window_bounds = array<i64: 8, 384>}, {pipeline_mode = #tpu.pipeline_mode<synchronous>, transform_indices = @transform_4, window_bounds = array<i64: 128, 384>}, {pipeline_mode = #tpu.pipeline_mode<synchronous>, transform_indices = @transform_5, window_bounds = array<i64: 128, 384>}, {pipeline_mode = #tpu.pipeline_mode<synchronous>, transform_indices = @transform_6, window_bounds = array<i64: 1, 128>}, {pipeline_mode = #tpu.pipeline_mode<synchronous>, transform_indices = @transform_7, window_bounds = array<i64: 128, 128>}, {pipeline_mode = #tpu.pipeline_mode<synchronous>, transform_indices = @transform_8, window_bounds = array<i64: 128, 128>}, {pipeline_mode = #tpu.pipeline_mode<synchronous>, transform_indices = @transform_9, window_bounds = array<i64: 1, 128>}, {transform_indices = @transform_10, window_bounds = array<i64: 1, 8, 128>}]} {
    %c0_i32 = arith.constant 0 : i32
    %0 = arith.cmpi eq, %arg0, %c0_i32 : i32
    %1 = arith.extui %0 : i1 to i32
    %c0_i32_0 = arith.constant 0 : i32
    %2 = arith.cmpi ne, %1, %c0_i32_0 : i32
    scf.if %2 {
      %c0_39 = arith.constant 0 : index
      %c0_40 = arith.constant 0 : index
      %69 = vector.load %arg3[%c0_39, %c0_40] : memref<8x128xf32, #tpu.memory_space<vmem>>, vector<8x128xf32>
      %c0_41 = arith.constant 0 : index
      %c0_42 = arith.constant 0 : index
      %70 = vector.load %arg12[%c0_41, %c0_42] : memref<8x128xf32, #tpu.memory_space<vmem>>, vector<8x128xf32>
      tpu.vector_store %arg12[%c0_41, %c0_42], %69 {strides = array<i32>} : memref<8x128xf32, #tpu.memory_space<vmem>>, vector<8x128xf32>,
    } else {
    }
    %c0 = arith.constant 0 : index
    %c0_1 = arith.constant 0 : index
    %c0_2 = arith.constant 0 : index
    %3 = vector.load %arg2[%c0, %c0_1, %c0_2] : memref<1x8x128xf32, #tpu.memory_space<vmem>>, vector<1x8x128xf32>
    %4 = vector.shape_cast %3 : vector<1x8x128xf32> to vector<8x128xf32>
    %c0_3 = arith.constant 0 : index
    %c0_4 = arith.constant 0 : index
    %c0_5 = arith.constant 0 : index
    %5 = vector.load %arg1[%c0_3, %c0_4, %c0_5] : memref<1x8x1xi32, #tpu.memory_space<vmem>>, vector<1x8x1xi32>
    %6 = vector.shape_cast %5 : vector<1x8x1xi32> to vector<8x1xi32>
    %c0_i32_6 = arith.constant 0 : i32
    %7 = vector.broadcast %c0_i32_6 : i32 to vector<8x1xi32>
    %8 = arith.cmpi sgt, %6, %7 : vector<8x1xi32>
    %c0_7 = arith.constant 0 : index
    %c0_8 = arith.constant 0 : index
    %9 = vector.load %arg12[%c0_7, %c0_8] : memref<8x128xf32, #tpu.memory_space<vmem>>, vector<8x128xf32>
    %c0_9 = arith.constant 0 : index
    %c0_10 = arith.constant 0 : index
    %10 = vector.load %arg5[%c0_9, %c0_10] : memref<128x384xf32, #tpu.memory_space<vmem>>, vector<128x384xf32>
    %cst = arith.constant dense<0.000000e+00> : vector<8x384xf32>
    %11 = tpu.matmul %4, %10, %cst {dimension_numbers = #tpu.dot_dimension_numbers<[1], [0], [0], [1], [0, 0, 1, 1], [], []>} : vector<8x128xf32>, vector<128x384xf32>, vector<8x384xf32> -> vector<8x384xf32>
    %c0_11 = arith.constant 0 : index
    %c0_12 = arith.constant 0 : index
    %12 = vector.load %arg4[%c0_11, %c0_12] : memref<8x384xf32, #tpu.memory_space<vmem>>, vector<8x384xf32>
    %13 = arith.addf %11, %12 : vector<8x384xf32>
    %c0_13 = arith.constant 0 : index
    %c0_14 = arith.constant 0 : index
    %14 = vector.load %arg6[%c0_13, %c0_14] : memref<128x384xf32, #tpu.memory_space<vmem>>, vector<128x384xf32>
    %cst_15 = arith.constant dense<0.000000e+00> : vector<8x384xf32>
    %15 = tpu.matmul %9, %14, %cst_15 {dimension_numbers = #tpu.dot_dimension_numbers<[1], [0], [0], [1], [0, 0, 1, 1], [], []>} : vector<8x128xf32>, vector<128x384xf32>, vector<8x384xf32> -> vector<8x384xf32>
    %16 = vector.extract_strided_slice %13 {offsets = [0, 0], sizes = [8, 128], strides = [1, 1]} : vector<8x384xf32> to vector<8x128xf32>
    %17 = vector.extract_strided_slice %15 {offsets = [0, 0], sizes = [8, 128], strides = [1, 1]} : vector<8x384xf32> to vector<8x128xf32>
    %18 = arith.addf %16, %17 : vector<8x128xf32>
    %cst_16 = arith.constant 5.000000e-01 : f32
    %19 = vector.broadcast %cst_16 : f32 to vector<8x128xf32>
    %20 = arith.mulf %19, %18 : vector<8x128xf32>
    %21 = math.tanh %20 : vector<8x128xf32>
    %cst_17 = arith.constant 5.000000e-01 : f32
    %22 = vector.broadcast %cst_17 : f32 to vector<8x128xf32>
    %23 = arith.mulf %22, %21 : vector<8x128xf32>
    %cst_18 = arith.constant 5.000000e-01 : f32
    %24 = vector.broadcast %cst_18 : f32 to vector<8x128xf32>
    %25 = arith.addf %23, %24 : vector<8x128xf32>
    %26 = vector.extract_strided_slice %13 {offsets = [0, 128], sizes = [8, 128], strides = [1, 1]} : vector<8x384xf32> to vector<8x128xf32>
    %27 = vector.extract_strided_slice %15 {offsets = [0, 128], sizes = [8, 128], strides = [1, 1]} : vector<8x384xf32> to vector<8x128xf32>
    %28 = arith.addf %26, %27 : vector<8x128xf32>
    %cst_19 = arith.constant 5.000000e-01 : f32
    %29 = vector.broadcast %cst_19 : f32 to vector<8x128xf32>
    %30 = arith.mulf %29, %28 : vector<8x128xf32>
    %31 = math.tanh %30 : vector<8x128xf32>
    %cst_20 = arith.constant 5.000000e-01 : f32
    %32 = vector.broadcast %cst_20 : f32 to vector<8x128xf32>
    %33 = arith.mulf %32, %31 : vector<8x128xf32>
    %cst_21 = arith.constant 5.000000e-01 : f32
    %34 = vector.broadcast %cst_21 : f32 to vector<8x128xf32>
    %35 = arith.addf %33, %34 : vector<8x128xf32>
    %36 = vector.extract_strided_slice %13 {offsets = [0, 256], sizes = [8, 128], strides = [1, 1]} : vector<8x384xf32> to vector<8x128xf32>
    %37 = vector.extract_strided_slice %15 {offsets = [0, 256], sizes = [8, 128], strides = [1, 1]} : vector<8x384xf32> to vector<8x128xf32>
    %c0_22 = arith.constant 0 : index
    %c0_23 = arith.constant 0 : index
    %38 = vector.load %arg7[%c0_22, %c0_23] : memref<1x128xf32, #tpu.memory_space<vmem>>, vector<1x128xf32>
    %39 = vector.broadcast %38 : vector<1x128xf32> to vector<8x128xf32>
    %40 = arith.addf %37, %39 : vector<8x128xf32>
    %41 = arith.mulf %25, %40 : vector<8x128xf32>
    %42 = arith.addf %36, %41 : vector<8x128xf32>
    %43 = math.tanh %42 : vector<8x128xf32>
    %cst_24 = arith.constant 1.000000e+00 : f32
    %44 = vector.broadcast %cst_24 : f32 to vector<8x128xf32>
    %45 = arith.subf %44, %35 : vector<8x128xf32>
    %46 = arith.mulf %45, %43 : vector<8x128xf32>
    %47 = arith.mulf %35, %9 : vector<8x128xf32>
    %48 = arith.addf %46, %47 : vector<8x128xf32>
    %49 = vector.shape_cast %8 : vector<8x1xi1> to vector<8x1xi1>
    %50 = vector.broadcast %49 : vector<8x1xi1> to vector<8x128xi1>
    %51 = arith.select %50, %9, %48 : vector<8x128xi1>, vector<8x128xf32>
    %c0_25 = arith.constant 0 : index
    %c0_26 = arith.constant 0 : index
    %52 = vector.load %arg12[%c0_25, %c0_26] : memref<8x128xf32, #tpu.memory_space<vmem>>, vector<8x128xf32>
    tpu.vector_store %arg12[%c0_25, %c0_26], %51 {strides = array<i32>} : memref<8x128xf32, #tpu.memory_space<vmem>>, vector<8x128xf32>,
    %cst_27 = arith.constant 0.000000e+00 : f32
    %53 = vector.shape_cast %8 : vector<8x1xi1> to vector<8x1xi1>
    %54 = vector.broadcast %53 : vector<8x1xi1> to vector<8x128xi1>
    %55 = vector.broadcast %cst_27 : f32 to vector<8x128xf32>
    %56 = arith.select %54, %55, %48 : vector<8x128xi1>, vector<8x128xf32>
    %c0_28 = arith.constant 0 : index
    %c0_29 = arith.constant 0 : index
    %57 = vector.load %arg8[%c0_28, %c0_29] : memref<128x128xf32, #tpu.memory_space<vmem>>, vector<128x128xf32>
    %cst_30 = arith.constant dense<0.000000e+00> : vector<8x128xf32>
    %58 = tpu.matmul %56, %57, %cst_30 {dimension_numbers = #tpu.dot_dimension_numbers<[1], [0], [0], [1], [0, 0, 1, 1], [], []>} : vector<8x128xf32>, vector<128x128xf32>, vector<8x128xf32> -> vector<8x128xf32>
    %c0_31 = arith.constant 0 : index
    %c0_32 = arith.constant 0 : index
    %59 = vector.load %arg9[%c0_31, %c0_32] : memref<128x128xf32, #tpu.memory_space<vmem>>, vector<128x128xf32>
    %cst_33 = arith.constant dense<0.000000e+00> : vector<8x128xf32>
    %60 = tpu.matmul %4, %59, %cst_33 {dimension_numbers = #tpu.dot_dimension_numbers<[1], [0], [0], [1], [0, 0, 1, 1], [], []>} : vector<8x128xf32>, vector<128x128xf32>, vector<8x128xf32> -> vector<8x128xf32>
    %61 = arith.addf %58, %60 : vector<8x128xf32>
    %c0_34 = arith.constant 0 : index
    %c0_35 = arith.constant 0 : index
    %62 = vector.load %arg10[%c0_34, %c0_35] : memref<1x128xf32, #tpu.memory_space<vmem>>, vector<1x128xf32>
    %63 = vector.broadcast %62 : vector<1x128xf32> to vector<8x128xf32>
    %64 = arith.addf %61, %63 : vector<8x128xf32>
    %65 = math.tanh %64 : vector<8x128xf32>
    %c0_36 = arith.constant 0 : index
    %c0_37 = arith.constant 0 : index
    %c0_38 = arith.constant 0 : index
    %66 = vector.load %arg11[%c0_36, %c0_37, %c0_38] : memref<1x8x128xf32, #tpu.memory_space<vmem>>, vector<1x8x128xf32>
    %67 = vector.shape_cast %66 : vector<1x8x128xf32> to vector<8x128xf32>
    %68 = vector.shape_cast %65 : vector<8x128xf32> to vector<1x8x128xf32>
    tpu.vector_store %arg11[%c0_36, %c0_37, %c0_38], %68 {strides = array<i32>} : memref<1x8x128xf32, #tpu.memory_space<vmem>>, vector<1x8x128xf32>,
    return
  }
  func.func @transform_0(%arg0: i32) -> (i32, i32, i32) {
    %c0_i32 = arith.constant 0 : i32
    %c0_i32_0 = arith.constant 0 : i32
    %c0_i32_1 = arith.constant 0 : i32
    return %arg0, %c0_i32, %c0_i32_0 : i32, i32, i32
  }
  func.func @transform_1(%arg0: i32) -> (i32, i32, i32) {
    %c0_i32 = arith.constant 0 : i32
    %c0_i32_0 = arith.constant 0 : i32
    %c0_i32_1 = arith.constant 0 : i32
    return %arg0, %c0_i32, %c0_i32_0 : i32, i32, i32
  }
  func.func @transform_2(%arg0: i32) -> (i32, i32) {
    %c0_i32 = arith.constant 0 : i32
    %c0_i32_0 = arith.constant 0 : i32
    %c0_i32_1 = arith.constant 0 : i32
    return %c0_i32, %c0_i32_0 : i32, i32
  }
  func.func @transform_3(%arg0: i32) -> (i32, i32) {
    %c0_i32 = arith.constant 0 : i32
    %c0_i32_0 = arith.constant 0 : i32
    %c0_i32_1 = arith.constant 0 : i32
    return %c0_i32, %c0_i32_0 : i32, i32
  }
  func.func @transform_4(%arg0: i32) -> (i32, i32) {
    %c0_i32 = arith.constant 0 : i32
    %c0_i32_0 = arith.constant 0 : i32
    %c0_i32_1 = arith.constant 0 : i32
    return %c0_i32, %c0_i32_0 : i32, i32
  }
  func.func @transform_5(%arg0: i32) -> (i32, i32) {
    %c0_i32 = arith.constant 0 : i32
    %c0_i32_0 = arith.constant 0 : i32
    %c0_i32_1 = arith.constant 0 : i32
    return %c0_i32, %c0_i32_0 : i32, i32
  }
  func.func @transform_6(%arg0: i32) -> (i32, i32) {
    %c0_i32 = arith.constant 0 : i32
    %c0_i32_0 = arith.constant 0 : i32
    %c0_i32_1 = arith.constant 0 : i32
    return %c0_i32, %c0_i32_0 : i32, i32
  }
  func.func @transform_7(%arg0: i32) -> (i32, i32) {
    %c0_i32 = arith.constant 0 : i32
    %c0_i32_0 = arith.constant 0 : i32
    %c0_i32_1 = arith.constant 0 : i32
    return %c0_i32, %c0_i32_0 : i32, i32
  }
  func.func @transform_8(%arg0: i32) -> (i32, i32) {
    %c0_i32 = arith.constant 0 : i32
    %c0_i32_0 = arith.constant 0 : i32
    %c0_i32_1 = arith.constant 0 : i32
    return %c0_i32, %c0_i32_0 : i32, i32
  }
  func.func @transform_9(%arg0: i32) -> (i32, i32) {
    %c0_i32 = arith.constant 0 : i32
    %c0_i32_0 = arith.constant 0 : i32
    %c0_i32_1 = arith.constant 0 : i32
    return %c0_i32, %c0_i32_0 : i32, i32
  }
  func.func @transform_10(%arg0: i32) -> (i32, i32, i32) {
    %c0_i32 = arith.constant 0 : i32
    %c0_i32_0 = arith.constant 0 : i32
    %c0_i32_1 = arith.constant 0 : i32
    return %arg0, %c0_i32, %c0_i32_0 : i32, i32, i32
  }
}

</mosaic_0001>

<bundles_post_ra>
// kernel: tpu_custom_call.1
= control target key start
LH: loop header
LB: loop body
LE: loop exit
PB: predicated region body
PF: predicated region fallthrough
CT: control target
= control target key end

     0   :  { %s2310_s0 = inlined_call_operand.vmem [shape: s32[8,8,1], index: 0, kind: input, shape index: {}]   ;;  %s2311_s1 = inlined_call_operand.vmem [shape: f32[8,8,128], index: 1, kind: input, shape index: {}]   ;;  %s2312_s2 = inlined_call_operand.vmem [shape: f32[8,128], index: 2, kind: input, shape index: {}]   ;;  %s2313_s3 = inlined_call_operand.hbm [shape: f32[8,384], index: 3, kind: input, shape index: {}]   ;;  %s2314_s4 = inlined_call_operand.hbm [shape: f32[128,384], index: 4, kind: input, shape index: {}]   ;;  %s2315_s5 = inlined_call_operand.hbm [shape: f32[128,384], index: 5, kind: input, shape index: {}]   ;;  %s2316_s6 = inlined_call_operand.vmem [shape: f32[1,128], index: 6, kind: input, shape index: {}]   ;;  %s2317_s7 = inlined_call_operand.hbm [shape: f32[128,128], index: 7, kind: input, shape index: {}]   ;;  %s2318_s8 = inlined_call_operand.hbm [shape: f32[128,128], index: 8, kind: input, shape index: {}]   ;;  %s2319_s9 = inlined_call_operand.vmem [shape: f32[1,128], index: 9, kind: input, shape index: {}]   ;;  %s2320_s10 = inlined_call_operand.hbm [shape: f32[8,8,128], index: 10, kind: output, shape index: {}]  }
   0x1   :  { %2333 = sst [smem:[#allocation22_spill]] %s2314_s4 }
   0x2   :  { %15 = vsyncpa [#allocation4], 0 }
   0x3   :  { %16 = vsyncpa [#allocation7], 0 }
   0x4   :  { %17 = vsyncpa [#allocation10], 0 }
   0x5   :  { %18 = vsyncpa [#allocation5], 0 }
   0x6   :  { %20 = vsyncpa [#allocation5 + $0x1], 0  ;;  %s1974_s13 = smov 0   ;;  %s1976_s14 = smov 0  }
   0x7   :  { %s1978_s15 = smov 0   ;;  %s1980_s16 = smov 0  }
   0x8 LB: > { %2334 = sst [smem:[#allocation17_spill]] %s1891_s13  ;;  %s1995_s17 = sadd.s32 4294967295, %s1903_s16   ;;  %s1903_s16 = sphi %s1980_s16, %s2361_s16   ;;  %s1899_s15 = sphi %s1978_s15, %s2363_s15   ;;  %s1895_s14 = sphi %s1976_s14, %s2365_s14   ;;  %s1891_s13 = sphi %s1974_s13, %s2364_s13  }
   0x9   : > { %2335 = sst [smem:[#allocation18_spill]] %s1899_s15  ;;  %s1184_s18 = sadd.s32 4294967294, %s1903_s16  }
   0xa   : > { %s1999_s19 = sadd.s32 1, %s1903_s16   ;;  %s253_s20 = sadd.s32 1, %s1899_s15 }
   0xb   : > { %2336 = sst [smem:[#allocation19_spill]] %s1999_s19  ;;  %s250_s21 = ssub.s32 %s1903_s16, %s1999_s19 }
   0xc   : > { %p263_p0 = scmp.ne.s32.totalorder %s1899_s15, %s1895_s14  ;;  %p251_p1 = scmp.eq.s32.totalorder %s250_s21, 0 }
   0xd   : > { %p264_p2 = scmp.eq.s32.totalorder %s1995_s17, 7  ;;  %p269_p3 = scmp.ne.s32.totalorder %s1895_s14, %s1891_s13 }
   0xe   : > { %p270_p4 = scmp.eq.s32.totalorder %s1184_s18, 7  ;;  %p1185_p7 = scmp.ge.s32.totalorder %s1903_s16, 1 }
   0xf   : > { %s2010_s22 = scalar_select %p251_p1, %s1899_s15, %s253_s20  }
  0x10   : > { %p2012_p5 = por %p264_p2, %p263_p0  ;;  %p2016_p6 = por %p270_p4, %p269_p3 }
  0x11   : > { %2337 = sst [smem:[#allocation20_spill]] %s2010_s22  ;;  %p277_p8 = scmp.lt.s32.totalorder %s1903_s16, 9 }
  0x12   : > { %s2338_s23 = scalar_select %p2012_p5, 1, 0 }
  0x13   : > { %s2339_s24 = scalar_select %p2016_p6, 1, 0 }
  0x14   : > { %p2321_p10 = scmp.eq.s32.totalorder %s1995_s17, 0  ;;  %p2024_p11 = pnand %p1185_p7, %p277_p8 }
  0x15   : > { %2340 = sst [smem:[#allocation21_spill]] %s2339_s24  ;;  %s1905_s26 = smov [#allocation6]  }
  0x16   : > { %s2341_s25 = scalar_select %p2024_p11, 1, 0 }
  0x17   : > { %s303_s27 = sshll.u32 %s1905_s26, 4  ;;  %p1604_p12 = pneg %p2024_p11  ;;  %s304_s27 = int_to_ptr.vmem [resolvable:$true] %s303_s27 }
  0x18   : > { %s1906_s29 = smov [#allocation9]   ;;  %s2343_s4 = sld [smem:[#allocation22_spill]] }
  0x19   : > { %p2032_p13 = pnand %p2321_p10, %p1604_p12  ;;  %s332_s30 = sshll.u32 %s1906_s29, 4  ;;  %s2036_s30 = int_to_ptr.vmem [resolvable:$true] %s332_s30 }
  0x1b   : > { %p2046_p1 = pneg %p2032_p13 }
  0x1e   : > { %s1689_s18 = scalar_lea.hbm %s2343_s4, 6144 }
  0x1f   : > { %p1690_p0 = scmp.ne.s32.totalorder %s2343_s4, %s1689_s18  ;;  %p1696_p4 = scmp.lt.u32.totalorder %s1689_s18, %s2343_s4 }
  0x21   : > { %p1692_p2 = pnand %p2046_p1, %p1690_p0 }
  0x23   : > { %p1693_p3 = pneg %p1692_p2 }
  0x25   : > { %p1698_p7 = pnand %p1696_p4, %p1693_p3 }
  0x27   : > { %1701 = shalt.err (!%p1698_p7)
}
  0x28   : > { %s1702_s11 = scalar_lea.vmem %s304_s27, 6144  ;;  %p1710_p10 = scmp.lt.s32.totalorder %s304_s27, %s304_s27 }
  0x29   : > { %p1703_p8 = scmp.ne.s32.totalorder %s304_s27, %s1702_s11  ;;  %p1711_p6 = scmp.lt.s32.totalorder %s1702_s11, %s1702_s11 }
  0x2b   : > { %p1705_p12 = pnand %p1703_p8, %p2046_p1  ;;  %p1712_p5 = por %p1711_p6, %p1710_p10 }
  0x2d   : > { %p1706_p9 = pneg %p1705_p12 }
  0x2f   : > { %p1713_p11 = pnand %p1712_p5, %p1706_p9 }
  0x31   : > { %1716 = shalt.err (!%p1713_p11)
}
  0x32   : > { %s2329_s12 = smov 384   ;;  %s2330_s20 = smov 24  }
  0x33   : > { %1610 = dma.hbm_to_vmem [thread:$0]  (!%p2032_p13), %s2343_s4, 6144, %s304_s27, [#allocation7], %s2329_s12, %s2329_s12, %s2330_s20  }
  0x34   : > { %s1717_s15 = scalar_lea.hbm %s2317_s7, 2048 }
  0x35   : > { %p1718_p5 = scmp.ne.s32.totalorder %s2317_s7, %s1717_s15  ;;  %p1724_p10 = scmp.lt.u32.totalorder %s1717_s15, %s2317_s7 }
  0x37   : > { %p1720_p6 = pnand %p1718_p5, %p2046_p1 }
  0x39   : > { %p1721_p9 = pneg %p1720_p6 }
  0x3b   : > { %p1726_p11 = pnand %p1724_p10, %p1721_p9 }
  0x3d   : > { %1729 = shalt.err (!%p1726_p11)
}
  0x3e   : > { %s1730_s27 = scalar_lea.vmem %s2036_s30, 2048  ;;  %p1738_p4 = scmp.lt.s32.totalorder %s2036_s30, %s2036_s30 }
  0x3f   : > { %p1731_p0 = scmp.ne.s32.totalorder %s2036_s30, %s1730_s27  ;;  %p1739_p7 = scmp.lt.s32.totalorder %s1730_s27, %s1730_s27 }
  0x41   : > { %p1733_p2 = pnand %p1731_p0, %p2046_p1  ;;  %p1740_p8 = por %p1739_p7, %p1738_p4 }
  0x43   : > { %p1734_p3 = pneg %p1733_p2 }
  0x45   : > { %p1741_p12 = pnand %p1740_p8, %p1734_p3 }
  0x47   : > { %1744 = shalt.err (!%p1741_p12)
}
  0x48   : > { %s2331_s19 = smov 128   ;;  %s2332_s13 = smov 8  }
  0x49   : > { %1616 = dma.hbm_to_vmem [thread:$0]  (!%p2032_p13), %s2317_s7, 2048, %s2036_s30, [#allocation10], %s2331_s19, %s2331_s19, %s2332_s13  }
  0x4a   : > { %s1911_s22 = smov [#allocation3]   ;;  %s1912_s21 = smov [#allocation8]  }
  0x4b   : > { %s293_s18 = sshll.u32 %s1911_s22, 4  ;;  %s316_s29 = sshll.u32 %s1912_s21, 4  ;;  %s294_s18 = int_to_ptr.vmem [resolvable:$true] %s293_s18  ;;  %s2091_s29 = int_to_ptr.vmem [resolvable:$true] %s316_s29 }
  0x4c   : > { %s1745_s12 = scalar_lea.hbm %s2313_s3, 384 }
  0x4d   : > { %p1746_p5 = scmp.ne.s32.totalorder %s2313_s3, %s1745_s12  ;;  %p1752_p10 = scmp.lt.u32.totalorder %s1745_s12, %s2313_s3 }
  0x4f   : > { %p1748_p6 = pnand %p1746_p5, %p2046_p1 }
  0x51   : > { %p1749_p9 = pneg %p1748_p6 }
  0x53   : > { %p1754_p11 = pnand %p1752_p10, %p1749_p9 }
  0x55   : > { %1757 = shalt.err (!%p1754_p11)
}
  0x56   : > { %s1758_s24 = scalar_lea.vmem %s294_s18, 384  ;;  %p1766_p4 = scmp.lt.s32.totalorder %s294_s18, %s294_s18 }
  0x57   : > { %p1759_p0 = scmp.ne.s32.totalorder %s294_s18, %s1758_s24  ;;  %p1767_p7 = scmp.lt.s32.totalorder %s1758_s24, %s1758_s24 }
  0x59   : > { %p1761_p2 = pnand %p1759_p0, %p2046_p1  ;;  %p1768_p8 = por %p1767_p7, %p1766_p4 }
  0x5b   : > { %p1762_p3 = pneg %p1761_p2 }
  0x5d   : > { %p1769_p12 = pnand %p1768_p8, %p1762_p3 }
  0x5f   : > { %1772 = shalt.err (!%p1769_p12)
}
  0x60   : > { %1607 = dma.hbm_to_vmem [thread:$0]  (!%p2032_p13), %s2313_s3, 384, %s294_s18, [#allocation4]  }
  0x61   : > { %s1773_s21 = scalar_lea.hbm %s2315_s5, 6144 }
  0x62   : > { %p1774_p5 = scmp.ne.s32.totalorder %s2315_s5, %s1773_s21  ;;  %p1780_p10 = scmp.lt.u32.totalorder %s1773_s21, %s2315_s5 }
  0x64   : > { %p1776_p6 = pnand %p1774_p5, %p2046_p1 }
  0x66   : > { %p1777_p9 = pneg %p1776_p6 }
  0x68   : > { %p1782_p11 = pnand %p1780_p10, %p1777_p9 }
  0x6a   : > { %1785 = shalt.err (!%p1782_p11)
}
  0x6b   : > { %s1786_s18 = scalar_lea.vmem %s2091_s29, 6144  ;;  %p1794_p4 = scmp.lt.s32.totalorder %s2091_s29, %s2091_s29 }
  0x6c   : > { %p1787_p0 = scmp.ne.s32.totalorder %s2091_s29, %s1786_s18  ;;  %p1795_p7 = scmp.lt.s32.totalorder %s1786_s18, %s1786_s18 }
  0x6e   : > { %p1789_p2 = pnand %p1787_p0, %p2046_p1  ;;  %p1796_p8 = por %p1795_p7, %p1794_p4 }
  0x70   : > { %p1790_p3 = pneg %p1789_p2 }
  0x72   : > { %p1797_p12 = pnand %p1796_p8, %p1790_p3 }
  0x74   : > { %1800 = shalt.err (!%p1797_p12)
}
  0x75   : > { %s2345_s24 = smov 24   ;;  %s2346_s4 = smov 384  }
  0x76   : > { %1613 = dma.hbm_to_vmem [thread:$0]  (!%p2032_p13), %s2315_s5, 6144, %s2091_s29, [#allocation7], %s2346_s4, %s2346_s4, %s2345_s24  }
  0x77   : > { %s1913_s22 = smov [#allocation11]   ;;  %s1801_s15 = scalar_lea.hbm %s2318_s8, 2048 }
  0x78   : > { %s345_s21 = sshll.u32 %s1913_s22, 4  ;;  %p1802_p5 = scmp.ne.s32.totalorder %s2318_s8, %s1801_s15  ;;  %s346_s21 = int_to_ptr.vmem [resolvable:$true] %s345_s21 }
  0x79   : > { %p1808_p10 = scmp.lt.u32.totalorder %s1801_s15, %s2318_s8 }
  0x7a   : > { %p1804_p6 = pnand %p1802_p5, %p2046_p1 }
  0x7c   : > { %p1805_p9 = pneg %p1804_p6 }
  0x7e   : > { %p1810_p11 = pnand %p1808_p10, %p1805_p9 }
  0x80   : > { %1813 = shalt.err (!%p1810_p11)
}
  0x81   : > { %s1814_s29 = scalar_lea.vmem %s346_s21, 2048  ;;  %p1822_p4 = scmp.lt.s32.totalorder %s346_s21, %s346_s21 }
  0x82   : > { %p1815_p0 = scmp.ne.s32.totalorder %s346_s21, %s1814_s29  ;;  %p1823_p7 = scmp.lt.s32.totalorder %s1814_s29, %s1814_s29 }
  0x84   : > { %p1817_p2 = pnand %p1815_p0, %p2046_p1  ;;  %p1824_p8 = por %p1823_p7, %p1822_p4 }
  0x86   : > { %p1818_p3 = pneg %p1817_p2 }
  0x88   : > { %p1825_p12 = pnand %p1824_p8, %p1818_p3 }
  0x8a   : > { %1828 = shalt.err (!%p1825_p12)
}
  0x8b   : > { %s2347_s24 = smov 8   ;;  %s2348_s4 = smov 128  }
  0x8c   : > { %1619 = dma.hbm_to_vmem [thread:$0]  (!%p2032_p13), %s2318_s8, 2048, %s346_s21, [#allocation10], %s2348_s4, %s2348_s4, %s2347_s24  }
  0x8d   : > { %p2349_p5 = scmp.ne.s32.totalorder %s2341_s25, 0 }
  0x8e   : > { %p2350_p1 = scmp.eq.s32.totalorder (!%p2349_p5), %s1995_s17, 0 }
  0x8f   : > { %378 = sbr.rel (%p2349_p5) target bundleno = 725 (0x2d5), region = 60 }
  0x96   : > { %1874 = dma.done.wait (%p2350_p1), [#allocation4], 384   ;;  %p2351_p6 = pmov %p2350_p1 }
  0x97   : > { %p2352_p9 = pmov %p2350_p1 }
  0x98   : > { %1876 = vsyncadd (%p2351_p6), [#allocation4], 4294966912 }
  0x99   : > { %1878 = dma.done.wait (%p2352_p9), [#allocation7], 12288   ;;  %p2353_p10 = pmov %p2350_p1 }
  0x9a   : > { %p2354_p11 = pmov %p2350_p1 }
  0x9b   : > { %1880 = vsyncadd (%p2353_p10), [#allocation7], 4294955008 }
  0x9c   : > { %1882 = dma.done.wait (%p2354_p11), [#allocation10], 4096   ;;  %p2355_p13 = pmov %p2350_p1 }
  0x9d   : > { %s432_s25 = sand.u32 1, %s1895_s14   ;;  %p435_p0 = scmp.lt.s32.totalorder %s1995_s17, 7 }
  0x9e   : > { %1884 = vsyncadd (%p2355_p13), [#allocation10], 4294963200  ;;  %s2176_s28 = sshll.u32 %s432_s25, 3  ;;  %p2356_p2 = scmp.ne.s32.totalorder %s1995_s17, 0 }
  0x9f   : > { %s436_s26 = scalar_select %p435_p0, %s1995_s17, 7 }
  0xa0   : > { %s434_s30 = scalar_lea.vmem [#allocation12], %s2176_s28  ;;  %446 = sbr.rel (%p2356_p2) target bundleno = 167 (0xa7), region = 84  ;;  %v447_v0 = vld [vmem:[%s2312_s2] sm:$0xff] (!%p2356_p2) }
  0xa1   : > { %s1199_s20 = sshll.u32 %s436_s26, 3  ;;  %448 = vst [vmem:[#allocation2] sm:$0xff] (!%p2356_p2), %v447_v0 }
  0xa2   : > { %s2182_s21 = scalar_lea.vmem %s2310_s0, %s1199_s20  ;;  %s2187_s15 = scalar_lea.vmem %s2311_s1, %s1199_s20 }
  0xa7 PF: > { %v454_v1 = vld [vmem:[#allocation6 + $0x8] sm:$0xff]  ;;  %v457_v2 = vld [vmem:[#allocation6 + $0x20] sm:$0xff]  ;;  %v456_v5 = vld [vmem:[#allocation6 + $0x18] sm:$0xff]  ;;  %v1914_v8 = vmov 0.0|0.0   ;;  %v1915_v9 = vmov 0.0   ;;  %vm1916_vm0 = vmmov 0  }
  0xa8   : > { %v453_v3 = vld [vmem:[#allocation6] sm:$0xff]  ;;  %v1418_v4 = vpack.c.bf16 %v457_v2, %v454_v1  ;;  %v460_v6 = vld [vmem:[#allocation6 + $0x38] sm:$0xff]  ;;  %v463_v7 = vld [vmem:[#allocation6 + $0x50] sm:$0xff]  ;;  %1450 = vmatprep.subr.bf16.mxu1 %v1914_v8  ;;  %568 = vmatprep.mubr.f32.mxu0 %v1915_v9  ;;  %v1917_v15 = vmov 0   ;;  %s1207_s26 = sshll.u32 %s1995_s17, 7  ;;  %s1063_s20 = sshll.u32 %s434_s30, 4  ;;  %s2266_s20 = int_to_ptr.vmem [resolvable:$true] %s1063_s20 }
  0xa9   : > { %v1420_v10 = vpack.c.bf16 %v456_v5, %v453_v3  ;;  %v1422_v11 = vpack.c.bf16 %v463_v7, %v460_v6  ;;  %v459_v12 = vld [vmem:[#allocation6 + $0x30] sm:$0xff]  ;;  %v462_v13 = vld [vmem:[#allocation6 + $0x48] sm:$0xff]  ;;  %1310 = vmatprep.mubr.msk.f32.mxu1 %vm1916_vm0, %v1915_v9  ;;  %1680 = vset.pattern.permute.xlu0 %v1917_v15  ;;  %v469_v16 = vld [vmem:[#allocation6 + $0x80] sm:$0xff]  ;;  %s1050_s11 = scalar_lea.sflag [#allocation5], %s432_s25  ;;  %s1829_s27 = scalar_lea.vmem %s2266_s20, 128 }
  0xaa   : > { %v466_v14 = vld [vmem:[#allocation6 + $0x68] sm:$0xff]  ;;  %1419 = vmatprep.subr.bf16.mxu0 %v1418_v4  ;;  %v1424_v17 = vpack.c.bf16 %v462_v13, %v459_v12  ;;  %v465_v19 = vld [vmem:[#allocation6 + $0x60] sm:$0xff]  ;;  %v468_v20 = vld [vmem:[#allocation6 + $0x78] sm:$0xff]  ;;  %p1830_p3 = scmp.ne.s32.totalorder %s2266_s20, %s1829_s27  ;;  %p2357_p4 = scmp.ne.s32.totalorder %s2338_s23, 0 }
  0xab   : > { %1421 = vmatpush1.bf16.msra.mxu0 %v1420_v10  ;;  %v1426_v18 = vpack.c.bf16 %v469_v16, %v466_v14  ;;  %v472_v21 = vld [vmem:[#allocation6 + $0x98] sm:$0xff]  ;;  %v475_v22 = vld [vmem:[#allocation6 + $0xb0] sm:$0xff]  ;;  %v458_v24 = vld [vmem:[#allocation6 + $0x28] sm:$0xff]  ;;  %v1428_v25 = vpack.c.bf16 %v468_v20, %v465_v19  ;;  %s1918_s17 = smov [#allocation12]  }
  0xac   : > { %1423 = vmatprep.subr.bf16.mxu0 %v1422_v11  ;;  %v455_v23 = vld [vmem:[#allocation6 + $0x10] sm:$0xff]  ;;  %v461_v27 = vld [vmem:[#allocation6 + $0x40] sm:$0xff]  ;;  %v1430_v28 = vpack.c.bf16 %v475_v22, %v472_v21  ;;  %v474_v30 = vld [vmem:[#allocation6 + $0xa8] sm:$0xff]  ;;  %p1831_p7 = pnand %p1830_p3, %p2357_p4 }
  0xad   : > { %v1451_v26 = vpack.c.bf16 %v458_v24, %v455_v23  ;;  %v471_v29 = vld [vmem:[#allocation6 + $0x90] sm:$0xff]  ;;  %v464_v31 = vld [vmem:[#allocation6 + $0x58] sm:$0xff]  ;;  %v478_v32 = vld [vmem:[#allocation6 + $0xc8] sm:$0xff] }
  0xae   : > { %v481_v33 = vld [vmem:[#allocation6 + $0xe0] sm:$0xff]  ;;  %v1454_v34 = vpack.c.bf16 %v464_v31, %v461_v27  ;;  %v467_v35 = vld [vmem:[#allocation6 + $0x70] sm:$0xff]  ;;  %v470_v36 = vld [vmem:[#allocation6 + $0x88] sm:$0xff]  ;;  %v1432_v37 = vpack.c.bf16 %v474_v30, %v471_v29  ;;  %p1832_p8 = pneg %p1831_p7 }
  0xaf   : > { %1425 = vmatpush1.bf16.msra.mxu0 %v1424_v17  ;;  %1452 = vmatpush3.bf16.msra.mxu1 %v1451_v26  ;;  %v1434_v38 = vpack.c.bf16 %v481_v33, %v478_v32  ;;  %v477_v39 = vld [vmem:[#allocation6 + $0xc0] sm:$0xff]  ;;  %v480_v40 = vld [vmem:[#allocation6 + $0xd8] sm:$0xff]  ;;  %v487_v42 = vld [vmem:[#allocation6 + $0x110] sm:$0xff]  ;;  %v1457_v43 = vpack.c.bf16 %v470_v36, %v467_v35 }
  0xb0   : > { %1427 = vmatprep.subr.bf16.mxu0 %v1426_v18  ;;  %1453 = vmatprep.subr.bf16.mxu1 %v1914_v8  ;;  %v484_v41 = vld [vmem:[#allocation6 + $0xf8] sm:$0xff]  ;;  %v473_v44 = vld [vmem:[#allocation6 + $0xa0] sm:$0xff]  ;;  %v1436_v46 = vpack.c.bf16 %v480_v40, %v477_v39  ;;  %v483_v48 = vld [vmem:[#allocation6 + $0xf0] sm:$0xff] }
  0xb1   : > { %v476_v45 = vld [vmem:[#allocation6 + $0xb8] sm:$0xff]  ;;  %v1438_v47 = vpack.c.bf16 %v487_v42, %v484_v41  ;;  %v486_v49 = vld [vmem:[#allocation6 + $0x108] sm:$0xff]  ;;  %v493_v51 = vld [vmem:[#allocation6 + $0x140] sm:$0xff] }
  0xb2   : > { %v490_v50 = vld [vmem:[#allocation6 + $0x128] sm:$0xff]  ;;  %v1460_v52 = vpack.c.bf16 %v476_v45, %v473_v44  ;;  %v479_v53 = vld [vmem:[#allocation6 + $0xd0] sm:$0xff]  ;;  %v1440_v55 = vpack.c.bf16 %v486_v49, %v483_v48  ;;  %v489_v57 = vld [vmem:[#allocation6 + $0x120] sm:$0xff] }
  0xb3   : > { %1429 = vmatpush1.bf16.msra.mxu0 %v1428_v25  ;;  %1455 = vmatpush3.bf16.msra.mxu1 %v1454_v34  ;;  %v482_v54 = vld [vmem:[#allocation6 + $0xe8] sm:$0xff]  ;;  %v1442_v56 = vpack.c.bf16 %v493_v51, %v490_v50  ;;  %v492_v58 = vld [vmem:[#allocation6 + $0x138] sm:$0xff]  ;;  %v499_v60 = vld [vmem:[#allocation6 + $0x170] sm:$0xff] }
  0xb4   : > { %1431 = vmatprep.subr.bf16.mxu0 %v1430_v28  ;;  %1456 = vmatprep.subr.bf16.mxu1 %v1914_v8  ;;  %v496_v59 = vld [vmem:[#allocation6 + $0x158] sm:$0xff]  ;;  %v1463_v61 = vpack.c.bf16 %v482_v54, %v479_v53  ;;  %v485_v62 = vld [vmem:[#allocation6 + $0x100] sm:$0xff]  ;;  %v1444_v0 = vpack.c.bf16 %v492_v58, %v489_v57  ;;  %v495_v2 = vld [vmem:[#allocation6 + $0x150] sm:$0xff] }
  0xb5   : > { %v488_v63 = vld [vmem:[#allocation6 + $0x118] sm:$0xff]  ;;  %v1446_v1 = vpack.c.bf16 %v499_v60, %v496_v59  ;;  %v498_v3 = vld [vmem:[#allocation6 + $0x168] sm:$0xff]  ;;  %v649_v5 = vld [vmem:[#allocation8 + $0x20] sm:$0xff] }
  0xb6   : > { %v646_v4 = vld [vmem:[#allocation8 + $0x8] sm:$0xff]  ;;  %v1466_v6 = vpack.c.bf16 %v488_v63, %v485_v62  ;;  %v491_v7 = vld [vmem:[#allocation6 + $0x130] sm:$0xff]  ;;  %v1448_v11 = vpack.c.bf16 %v498_v3, %v495_v2  ;;  %v645_v13 = vld [vmem:[#allocation8] sm:$0xff] }
  0xb7   : > { %1433 = vmatpush1.bf16.msra.mxu0 %v1432_v37  ;;  %1458 = vmatpush3.bf16.msra.mxu1 %v1457_v43  ;;  %v494_v10 = vld [vmem:[#allocation6 + $0x148] sm:$0xff]  ;;  %v1474_v12 = vpack.c.bf16 %v649_v5, %v646_v4  ;;  %v648_v14 = vld [vmem:[#allocation8 + $0x18] sm:$0xff]  ;;  %v655_v17 = vld [vmem:[#allocation8 + $0x50] sm:$0xff] }
  0xb8   : > { %1435 = vmatprep.subr.bf16.mxu0 %v1434_v38  ;;  %1459 = vmatprep.subr.bf16.mxu1 %v1914_v8  ;;  %v652_v16 = vld [vmem:[#allocation8 + $0x38] sm:$0xff]  ;;  %v1469_v18 = vpack.c.bf16 %v494_v10, %v491_v7  ;;  %v497_v19 = vld [vmem:[#allocation6 + $0x160] sm:$0xff]  ;;  %v1476_v22 = vpack.c.bf16 %v648_v14, %v645_v13  ;;  %v651_v25 = vld [vmem:[#allocation8 + $0x30] sm:$0xff] }
  0xb9   : > { %v500_v20 = vld [vmem:[#allocation6 + $0x178] sm:$0xff]  ;;  %v1478_v24 = vpack.c.bf16 %v655_v17, %v652_v16  ;;  %v654_v26 = vld [vmem:[#allocation8 + $0x48] sm:$0xff]  ;;  %v661_v28 = vld [vmem:[#allocation8 + $0x80] sm:$0xff] }
  0xba   : > { %v2207_v21 = vld [vmem:[%s2187_s15] sm:$0xff]  ;;  %v658_v27 = vld [vmem:[#allocation8 + $0x68] sm:$0xff]  ;;  %v1472_v29 = vpack.c.bf16 %v500_v20, %v497_v19  ;;  %v647_v31 = vld [vmem:[#allocation8 + $0x10] sm:$0xff]  ;;  %v1480_v33 = vpack.c.bf16 %v654_v26, %v651_v25  ;;  %s1833_s15 = sshll.u32 %s1918_s17, 4  ;;  %s1834_s15 = int_to_ptr.vmem [resolvable:$false] %s1833_s15 }
  0xbb   : > { %1437 = vmatpush1.bf16.msra.mxu0 %v1436_v46  ;;  %1461 = vmatpush3.bf16.msra.mxu1 %v1460_v52  ;;  %v450_v23 = vld [vmem:[%s2182_s21] sm:$0xff]  ;;  %v650_v32 = vld [vmem:[#allocation8 + $0x28] sm:$0xff]  ;;  %v1482_v34 = vpack.c.bf16 %v661_v28, %v658_v27  ;;  %v657_v35 = vld [vmem:[#allocation8 + $0x60] sm:$0xff]  ;;  %s2264_s21 = scalar_lea.hbm %s2320_s10, %s1207_s26  ;;  %s1835_s18 = scalar_lea.vmem %s1834_s15, 256 }
  0xbc   : > { %1439 = vmatprep.subr.bf16.mxu0 %v1438_v47  ;;  %1462 = vmatprep.subr.bf16.mxu1 %v1914_v8  ;;  %vm451_vm1 = vcmp.gt.s32.totalorder %v450_v23, 0  ;;  %v660_v36 = vld [vmem:[#allocation8 + $0x78] sm:$0xff]  ;;  %v667_v38 = vld [vmem:[#allocation8 + $0xb0] sm:$0xff]  ;;  %v1507_v39 = vpack.c.bf16 %v650_v32, %v647_v31  ;;  %v666_v44 = vld [vmem:[#allocation8 + $0xa8] sm:$0xff]  ;;  %p1836_p12 = scmp.lt.s32.totalorder %s2266_s20, %s1834_s15  ;;  %p1837_p5 = scmp.lt.s32.totalorder %s1835_s18, %s1829_s27 }
  0xbd   : > { %v859_v30 = vsel %vm451_vm1, 1, %v1917_v15  ;;  %v664_v37 = vld [vmem:[#allocation8 + $0x98] sm:$0xff]  ;;  %v653_v15 = vld [vmem:[#allocation8 + $0x40] sm:$0xff]  ;;  %v1484_v41 = vpack.c.bf16 %v660_v36, %v657_v35  ;;  %v663_v43 = vld [vmem:[#allocation8 + $0x90] sm:$0xff] }
  0xbe   : > { %861 = vperm.xlu0 %1680, %v859_v30   ;;  %v656_v40 = vld [vmem:[#allocation8 + $0x58] sm:$0xff]  ;;  %v1486_v42 = vpack.c.bf16 %v667_v38, %v664_v37  ;;  %v670_v45 = vld [vmem:[#allocation8 + $0xc8] sm:$0xff]  ;;  %v673_v46 = vld [vmem:[#allocation8 + $0xe0] sm:$0xff]  ;;  %v1488_v50 = vpack.c.bf16 %v666_v44, %v663_v43  ;;  %p1838_p1 = por %p1837_p5, %p1836_p12 }
  0xbf   : > { %1441 = vmatpush1.bf16.msra.mxu0 %v1440_v55  ;;  %1464 = vmatpush3.bf16.msra.mxu1 %v1463_v61  ;;  %v1510_v47 = vpack.c.bf16 %v656_v40, %v653_v15  ;;  %v659_v48 = vld [vmem:[#allocation8 + $0x70] sm:$0xff]  ;;  %v662_v49 = vld [vmem:[#allocation8 + $0x88] sm:$0xff]  ;;  %v1490_v51 = vpack.c.bf16 %v673_v46, %v670_v45  ;;  %v669_v52 = vld [vmem:[#allocation8 + $0xc0] sm:$0xff] }
  0xc0   : > { %1443 = vmatprep.subr.bf16.mxu0 %v1442_v56  ;;  %1465 = vmatprep.subr.bf16.mxu1 %v1914_v8  ;;  %v672_v53 = vld [vmem:[#allocation8 + $0xd8] sm:$0xff]  ;;  %v679_v55 = vld [vmem:[#allocation8 + $0x110] sm:$0xff]  ;;  %v1513_v56 = vpack.c.bf16 %v662_v49, %v659_v48  ;;  %v665_v57 = vld [vmem:[#allocation8 + $0xa0] sm:$0xff]  ;;  %p1839_p6 = pnand %p1838_p1, %p1832_p8 }
  0xc1   : > { %v676_v54 = vld [vmem:[#allocation8 + $0xf8] sm:$0xff]  ;;  %v1492_v59 = vpack.c.bf16 %v672_v53, %v669_v52  ;;  %v675_v61 = vld [vmem:[#allocation8 + $0xf0] sm:$0xff]  ;;  %v678_v62 = vld [vmem:[#allocation8 + $0x108] sm:$0xff] }
  0xc2   : > { %v668_v58 = vld [vmem:[#allocation8 + $0xb8] sm:$0xff]  ;;  %v1494_v60 = vpack.c.bf16 %v679_v55, %v676_v54  ;;  %v682_v63 = vld [vmem:[#allocation8 + $0x128] sm:$0xff]  ;;  %v671_v2 = vld [vmem:[#allocation8 + $0xd0] sm:$0xff]  ;;  %v1496_v4 = vpack.c.bf16 %v678_v62, %v675_v61 }
  0xc3   : > { %1445 = vmatpush1.bf16.msra.mxu0 %v1444_v0  ;;  %1467 = vmatpush3.bf16.msra.mxu1 %v1466_v6  ;;  %v685_v0 = vld [vmem:[#allocation8 + $0x140] sm:$0xff]  ;;  %v674_v3 = vld [vmem:[#allocation8 + $0xe8] sm:$0xff]  ;;  %v684_v7 = vld [vmem:[#allocation8 + $0x138] sm:$0xff] }
  0xc4   : > { %1447 = vmatprep.subr.bf16.mxu0 %v1446_v1  ;;  %1468 = vmatprep.subr.bf16.mxu1 %v1914_v8  ;;  %v1516_v1 = vpack.c.bf16 %v668_v58, %v665_v57  ;;  %v1498_v5 = vpack.c.bf16 %v685_v0, %v682_v63  ;;  %v681_v6 = vld [vmem:[#allocation8 + $0x120] sm:$0xff]  ;;  %v688_v10 = vld [vmem:[#allocation8 + $0x158] sm:$0xff]  ;;  %v690_v19 = vld [vmem:[#allocation8 + $0x168] sm:$0xff] }
  0xc5   : > { %v677_v13 = vld [vmem:[#allocation8 + $0x100] sm:$0xff]  ;;  %v680_v14 = vld [vmem:[#allocation8 + $0x118] sm:$0xff]  ;;  %v1500_v16 = vpack.c.bf16 %v684_v7, %v681_v6  ;;  %v686_v23 = vld [vmem:[#allocation8 + $0x148] sm:$0xff] }
  0xc6   : > { %v1522_v20 = vpack.c.bf16 %v680_v14, %v677_v13  ;;  %v689_v26 = vld [vmem:[#allocation8 + $0x160] sm:$0xff]  ;;  %v692_v27 = vld [vmem:[#allocation8 + $0x178] sm:$0xff]  ;;  %v884_v31 = vld [vmem:[#allocation11 + $0x8] sm:$0xff] }
  0xc7   : > { %1449 = vmatpush1.bf16.msra.mxu0 %v1448_v11  ;;  %1470 = vmatpush3.bf16.msra.mxu1 %v1469_v18  ;;  %v691_v11 = vld [vmem:[#allocation8 + $0x170] sm:$0xff]  ;;  %v2224_v28 = vld [vmem:[#allocation2] sm:$0xff]  ;;  %v886_v37 = vld [vmem:[#allocation11 + $0x18] sm:$0xff] }
  0xc8   : > { %1475 = vmatprep.subr.bf16.mxu0 %v1474_v12  ;;  %1471 = vmatprep.subr.bf16.mxu1 %v1914_v8  ;;  %v1519_v12 = vpack.c.bf16 %v674_v3, %v671_v2  ;;  %v1502_v17 = vpack.c.bf16 %v691_v11, %v688_v10  ;;  %v687_v18 = vld [vmem:[#allocation8 + $0x150] sm:$0xff]  ;;  %v883_v30 = vld [vmem:[#allocation11] sm:$0xff]  ;;  %v870_v15 = vld [vmem:[#allocation9 + $0x18] sm:$0xff] }
  0xc9   : > { %v1531_v32 = vpack.c.bf16 %v884_v31, %v883_v30  ;;  %v885_v36 = vld [vmem:[#allocation11 + $0x10] sm:$0xff]  ;;  %v871_v43 = vld [vmem:[#allocation9 + $0x20] sm:$0xff]  ;;  %v872_v44 = vld [vmem:[#allocation9 + $0x28] sm:$0xff] }
  0xca   : > { %569 = vmatmul.mubr.f32.vlgmr.msra.gmra.mrb[0].mxu0 %v2207_v21  ;;  %v1534_v38 = vpack.c.bf16 %v886_v37, %v885_v36  ;;  %v1561_v45 = vpack.c.bf16 %v872_v44, %v871_v43  ;;  %v889_v46 = vld [vmem:[#allocation11 + $0x30] sm:$0xff]  ;;  %v891_v52 = vld [vmem:[#allocation11 + $0x40] sm:$0xff]  ;;  %v892_v53 = vld [vmem:[#allocation11 + $0x48] sm:$0xff] }
  0xcb   : > { %1477 = vmatpush1.bf16.msra.mxu0 %v1476_v22  ;;  %757 = vmatprep.mubr.f32.mxu0 %v1915_v9  ;;  %v683_v22 = vld [vmem:[#allocation8 + $0x130] sm:$0xff]  ;;  %v1543_v54 = vpack.c.bf16 %v892_v53, %v891_v52  ;;  %v875_v55 = vld [vmem:[#allocation9 + $0x40] sm:$0xff]  ;;  %v878_v62 = vld [vmem:[#allocation9 + $0x58] sm:$0xff] }
  0xcc   : > { %1479 = vmatprep.subr.bf16.mxu0 %v1478_v24  ;;  %1473 = vmatpush3.bf16.msra.mxu1 %v1472_v29  ;;  %v1504_v24 = vpack.c.bf16 %v690_v19, %v687_v18  ;;  %v1525_v25 = vpack.c.bf16 %v686_v23, %v683_v22  ;;  %v1528_v29 = vpack.c.bf16 %v692_v27, %v689_v26  ;;  %v873_v49 = vld [vmem:[#allocation9 + $0x30] sm:$0xff]  ;;  %v895_v63 = vld [vmem:[#allocation11 + $0x60] sm:$0xff]  ;;  %v896_v0 = vld [vmem:[#allocation11 + $0x68] sm:$0xff] }
  0xcd   : > { %1506 = vmatprep.subr.bf16.mxu1 %v1914_v8  ;;  %v893_v58 = vld [vmem:[#allocation11 + $0x50] sm:$0xff]  ;;  %v879_v2 = vld [vmem:[#allocation9 + $0x60] sm:$0xff]  ;;  %v880_v3 = vld [vmem:[#allocation9 + $0x68] sm:$0xff] }
  0xce   : > { %v897_v6 = vld [vmem:[#allocation11 + $0x70] sm:$0xff]  ;;  %v898_v7 = vld [vmem:[#allocation11 + $0x78] sm:$0xff] }
  0xcf   : > { %1481 = vmatpush1.bf16.msra.mxu0 %v1480_v33  ;;  %1311 = vmatmul.mubr.f32.vlgmr.msra.gmra.mrb[0].mxu1 %v2207_v21  ;;  %v867_v33 = vld [vmem:[#allocation9] sm:$0xff]  ;;  %v1552_v10 = vpack.c.bf16 %v898_v7, %v897_v6  ;;  %v881_v11 = vld [vmem:[#allocation9 + $0x70] sm:$0xff]  ;;  %v1202_v27 = vld [vmem:[%s2316_s6] ss:$0 sm:$0xff] }
  0xd0   : > { %1483 = vmatprep.subr.bf16.mxu0 %v1482_v34  ;;  %1508 = vmatpush3.bf16.msra.mxu1 %v1507_v39  ;;  %v868_v34 = vld [vmem:[#allocation9 + $0x8] sm:$0xff]  ;;  %v869_v39 = vld [vmem:[#allocation9 + $0x10] sm:$0xff]  ;;  %v503_v31 = vld [vmem:[#allocation3 + $0x10] sm:$0xff] }
  0xd1   : > { %1345 = vmatprep.mubr.msk.f32.mxu1 %vm1916_vm0, %v1915_v9  ;;  %1509 = vmatprep.subr.bf16.mxu1 %v1914_v8  ;;  %v1555_v35 = vpack.c.bf16 %v868_v34, %v867_v33  ;;  %v1558_v40 = vpack.c.bf16 %v870_v15, %v869_v39 }
  0xd3   : > { %1485 = vmatpush1.bf16.msra.mxu0 %v1484_v41  ;;  %v888_v41 = vld [vmem:[#allocation11 + $0x28] sm:$0xff] }
  0xd4   : > { %1487 = vmatprep.subr.bf16.mxu0 %v1486_v42  ;;  %1511 = vmatpush3.bf16.msra.mxu1 %v1510_v47  ;;  %v890_v47 = vld [vmem:[#allocation11 + $0x38] sm:$0xff] }
  0xd5   : > { %1512 = vmatprep.subr.bf16.mxu1 %v1914_v8  ;;  %v1540_v48 = vpack.c.bf16 %v890_v47, %v889_v46  ;;  %v1205_v47 = vld [vmem:[%s2319_s9] ss:$0 sm:$0xff] }
  0xd7   : > { %1489 = vmatpush1.bf16.msra.mxu0 %v1488_v50  ;;  %v874_v50 = vld [vmem:[#allocation9 + $0x38] sm:$0xff] }
  0xd8   : > { %1491 = vmatprep.subr.bf16.mxu0 %v1490_v51  ;;  %1514 = vmatpush3.bf16.msra.mxu1 %v1513_v56  ;;  %v1564_v51 = vpack.c.bf16 %v874_v50, %v873_v49  ;;  %v876_v56 = vld [vmem:[#allocation9 + $0x48] sm:$0xff] }
  0xd9   : > { %1515 = vmatprep.subr.bf16.mxu1 %v1914_v8  ;;  %v1567_v57 = vpack.c.bf16 %v876_v56, %v875_v55 }
  0xdb   : > { %1493 = vmatpush1.bf16.msra.mxu0 %v1492_v59  ;;  %v894_v59 = vld [vmem:[#allocation11 + $0x58] sm:$0xff] }
  0xdc   : > { %1495 = vmatprep.subr.bf16.mxu0 %v1494_v60  ;;  %1517 = vmatpush3.bf16.msra.mxu1 %v1516_v1  ;;  %v877_v60 = vld [vmem:[#allocation9 + $0x50] sm:$0xff]  ;;  %v1546_v61 = vpack.c.bf16 %v894_v59, %v893_v58 }
  0xdd   : > { %1518 = vmatprep.subr.bf16.mxu1 %v1914_v8  ;;  %v1570_v1 = vpack.c.bf16 %v878_v62, %v877_v60 }
  0xdf   : > { %1497 = vmatpush1.bf16.msra.mxu0 %v1496_v4  ;;  %v1549_v4 = vpack.c.bf16 %v896_v0, %v895_v63 }
  0xe0   : > { %1499 = vmatprep.subr.bf16.mxu0 %v1498_v5  ;;  %1520 = vmatpush3.bf16.msra.mxu1 %v1519_v12  ;;  %v1573_v5 = vpack.c.bf16 %v880_v3, %v879_v2  ;;  %v882_v12 = vld [vmem:[#allocation9 + $0x78] sm:$0xff] }
  0xe1   : > { %1521 = vmatprep.subr.bf16.mxu1 %v1914_v8  ;;  %v1576_v13 = vpack.c.bf16 %v882_v12, %v881_v11 }
  0xe3   : > { %1501 = vmatpush1.bf16.msra.mxu0 %v1500_v16 }
  0xe4   : > { %1503 = vmatprep.subr.bf16.mxu0 %v1502_v17  ;;  %1523 = vmatpush3.bf16.msra.mxu1 %v1522_v20  ;;  %v501_v17 = vld [vmem:[#allocation3] sm:$0xff]  ;;  %v502_v20 = vld [vmem:[#allocation3 + $0x8] sm:$0xff] }
  0xe5   : > { %1524 = vmatprep.subr.bf16.mxu1 %v1914_v8 }
  0xe7   : > { %1505 = vmatpush1.bf16.msra.mxu0 %v1504_v24 }
  0xe8   : > { %1530 = vmatprep.subr.bf16.mxu0 %v1914_v8  ;;  %1526 = vmatpush3.bf16.msra.mxu1 %v1525_v25 }
  0xe9   : > { %1527 = vmatprep.subr.bf16.mxu1 %v1914_v8 }
  0xea   : > { %758 = vmatmul.mubr.f32.vlgmr.msra.gmra.mrb[0].mxu0 %v2224_v28 }
  0xeb   : > { %1380 = vmatprep.mubr.msk.f32.mxu0 %vm1916_vm0, %v1915_v9  ;;  %1532 = vmatpush3.bf16.msra.mxu0 %v1531_v32 }
  0xec   : > { %1529 = vmatpush3.bf16.msra.mxu1 %v1528_v29  ;;  %1533 = vmatprep.subr.bf16.mxu0 %v1914_v8 }
  0xed   : > { %1554 = vmatprep.subr.bf16.mxu1 %v1914_v8 }
  0xef   : > { %1346 = vmatmul.mubr.f32.vlgmr.msra.gmra.mrb[2].mxu1 %v2224_v28  ;;  %1535 = vmatpush3.bf16.msra.mxu0 %v1534_v38 }
  0xf0   : > { %1415 = vmatprep.mubr.msk.f32.mxu1 %vm1916_vm0, %v1915_v9  ;;  %1556 = vmatpush3.bf16.msra.mxu1 %v1555_v35  ;;  %v887_v9 = vld [vmem:[#allocation11 + $0x20] sm:$0xff] }
  0xf1   : > { %1557 = vmatprep.subr.bf16.mxu1 %v1914_v8  ;;  %1536 = vmatprep.subr.bf16.mxu0 %v1914_v8  ;;  %v1537_v42 = vpack.c.bf16 %v888_v41, %v887_v9 }
  0xf3   : > { %1538 = vmatpush3.bf16.msra.mxu0 %v1537_v42 }
  0xf4   : > { %1559 = vmatpush3.bf16.msra.mxu1 %v1558_v40  ;;  %1539 = vmatprep.subr.bf16.mxu0 %v1914_v8 }
  0xf5   : > { %1560 = vmatprep.subr.bf16.mxu1 %v1914_v8 }
  0xf7   : > { %1541 = vmatpush3.bf16.msra.mxu0 %v1540_v48 }
  0xf8   : > { %1562 = vmatpush3.bf16.msra.mxu1 %v1561_v45  ;;  %1542 = vmatprep.subr.bf16.mxu0 %v1914_v8 }
  0xf9   : > { %1563 = vmatprep.subr.bf16.mxu1 %v1914_v8 }
  0xfb   : > { %1544 = vmatpush3.bf16.msra.mxu0 %v1543_v54 }
  0xfc   : > { %1565 = vmatpush3.bf16.msra.mxu1 %v1564_v51  ;;  %1545 = vmatprep.subr.bf16.mxu0 %v1914_v8 }
  0xfd   : > { %1566 = vmatprep.subr.bf16.mxu1 %v1914_v8 }
  0xff   : > { %1547 = vmatpush3.bf16.msra.mxu0 %v1546_v61 }
 0x100   : > { %1568 = vmatpush3.bf16.msra.mxu1 %v1567_v57  ;;  %1548 = vmatprep.subr.bf16.mxu0 %v1914_v8 }
 0x101   : > { %1569 = vmatprep.subr.bf16.mxu1 %v1914_v8 }
 0x103   : > { %1550 = vmatpush3.bf16.msra.mxu0 %v1549_v4 }
 0x104   : > { %1571 = vmatpush3.bf16.msra.mxu1 %v1570_v1  ;;  %1551 = vmatprep.subr.bf16.mxu0 %v1914_v8 }
 0x105   : > { %1572 = vmatprep.subr.bf16.mxu1 %v1914_v8 }
 0x107   : > { %1553 = vmatpush3.bf16.msra.mxu0 %v1552_v10 }
 0x108   : > { %1574 = vmatpush3.bf16.msra.mxu1 %v1573_v5 }
 0x109   : > { %1575 = vmatprep.subr.bf16.mxu1 %v1914_v8 }
 0x10a   : > { %1381 = vmatmul.mubr.f32.vlgmr.msra.gmra.mrb[2].mxu0 %v2207_v21 }
 0x10c   : > { %1577 = vmatpush3.bf16.msra.mxu1 %v1576_v13 }
 0x13d   : > { %v862_v39 = vpop.permute.xlu0 %861 }
 0x13e   : > { %vm863_vm2 = vcmp.eq.s32.totalorder %v862_v39, 1 }
 0x13f   : > { %vm1203_vm3 = vmneg %vm863_vm2 }
 0x1a2   : > { %v641_v14 = vpop.f32.mrb[0].mxu1 }
 0x1a3   : > { %v1312_v16 = vpop.f32.mrb[1].mxu1  ;;  %v642_v33 = vadd.f32 %v641_v14, %v503_v31 }
 0x1bd   : > { %v759_v18 = vpop.f32.mrb[0].mxu0 }
 0x1be   : > { %v1578_v19 = vadd.f32 %v759_v18, %v501_v17  ;;  %v761_v22 = vpop.f32.mrb[1].mxu0 }
 0x1bf   : > { %v1579_v24 = vadd.f32 %v761_v22, %v502_v20 }
 0x1c0   : > { %v835_v23 = vmul.f32 0.5, %v1578_v19 }
 0x1c1   : > { %v840_v8 = vmul.f32 0.5, %v1579_v24 }
 0x1c2   : > { %1681 = vtanh.f32 %v835_v23  ;;  %v830_v25 = vpop.f32.mrb[2].mxu1 }
 0x1c3   : > { %v1347_v26 = vpop.f32.mrb[3].mxu1  ;;  %1683 = vtanh.f32 %v840_v8  ;;  %v851_v30 = vadd.f32 %v1202_v27, %v830_v25 }
 0x1cc   : > { %v1682_v29 = vpop.eup %1681 }
 0x1cd   : > { %v837_v21 = vmul.f32 0.5, %v1682_v29  ;;  %v1684_v35 = vpop.eup %1683 }
 0x1ce   : > { %v842_v37 = vmul.f32 0.5, %v1684_v35 }
 0x1cf   : > { %v838_v32 = vadd.f32 0.5, %v837_v21 }
 0x1d0   : > { %v843_v38 = vadd.f32 0.5, %v842_v37 }
 0x1d1   : > { %v852_v34 = vmul.f32 %v851_v30, %v838_v32 }
 0x1d2   : > { %v855_v15 = vsub.f32 1.0, %v843_v38  ;;  %v857_v9 = vmul.f32 %v843_v38, %v2224_v28 }
 0x1d3   : > { %v853_v36 = vadd.f32 %v852_v34, %v642_v33 }
 0x1d5   : > { %1685 = vtanh.f32 %v853_v36 }
 0x1dd   : > { %v965_v44 = vpop.f32.mrb[2].mxu0 }
 0x1de   : > { %v1382_v45 = vpop.f32.mrb[3].mxu0 }
 0x1df   : > { %v1686_v40 = vpop.eup %1685 }
 0x1e0   : > { %v856_v41 = vmul.f32 %v1686_v40, %v855_v15 }
 0x1e2   : > { %v858_v42 = vadd.f32 %v857_v9, %v856_v41 }
 0x1e4   : > { %v864_v43 = vsel %vm863_vm2, %v2224_v28, %v858_v42  ;;  %1416 = vmatmul.mubr.msk.f32.vlgmr.msra.gmra.mrb[4].mxu1 %vm1203_vm3, %v858_v42 }
 0x1e5   : > { %865 = vst [vmem:[#allocation2] sm:$0xff] %v864_v43 }
 0x2b7   : > { %v1035_v46 = vpop.f32.mrb[4].mxu1 }
 0x2b8   : > { %v1036_v48 = vadd.f32 %v1035_v46, %v965_v44  ;;  %v1417_v49 = vpop.f32.mrb[5].mxu1 }
 0x2ba   : > { %v1046_v50 = vadd.f32 %v1205_v47, %v1036_v48 }
 0x2bc   : > { %1687 = vtanh.f32 %v1046_v50 }
 0x2c6   : > { %v1688_v28 = vpop.eup %1687 }
 0x2c7   : > { %1048 = vst [vmem:[%s434_s30] sm:$0xff] %v1688_v28 }
 0x2c8   : > { %1842 = shalt.err (!%p1839_p6)
}
 0x2c9   : > { %s1843_s25 = scalar_lea.hbm %s2264_s21, 128  ;;  %s1847_s29 = scalar_lea.hbm %s2320_s10, 1024 }
 0x2ca   : > { %p1844_p9 = scmp.ne.s32.totalorder %s2264_s21, %s1843_s25  ;;  %p1848_p13 = scmp.lt.u32.totalorder %s2264_s21, %s2320_s10 }
 0x2cb   : > { %p1849_p0 = scmp.lt.u32.totalorder %s1847_s29, %s1843_s25  ;;  %p1851_p3 = scmp.lt.u32.totalorder %s1843_s25, %s2264_s21 }
 0x2cc   : > { %p1845_p10 = pnand %p1844_p9, %p2357_p4 }
 0x2cd   : > { %p1850_p2 = por %p1849_p0, %p1848_p13 }
 0x2ce   : > { %p1846_p11 = pneg %p1845_p10 }
 0x2cf   : > { %p1852_p7 = por %p1851_p3, %p1850_p2 }
 0x2d1   : > { %p1853_p8 = pnand %p1852_p7, %p1846_p11 }
 0x2d3   : > { %1856 = shalt.err (!%p1853_p8)
}
 0x2d4   : > { %1602 = dma.vmem_to_hbm [thread:$0]  (%p2357_p4), %s2266_s20, 128, %s2264_s21, %s1050_s11  }
 0x2d5 PF: > { %s2358_s19 = sld [smem:[#allocation17_spill]]  ;;  %s2359_s13 = sld [smem:[#allocation21_spill]] }
 0x2d6   : > { %p1634_p12 = scmp.ge.s32.totalorder %s1903_s16, 2 }
 0x2db   : > { %s1075_s26 = sand.u32 1, %s2358_s19   ;;  %p2360_p5 = scmp.ne.s32.totalorder %s2359_s13, 0 }
 0x2dc   : > { %s1076_s12 = scalar_lea.sflag [#allocation5], %s1075_s26 }
 0x2dd   : > { %p1621_p1 = pnand %p1634_p12, %p2360_p5 }
 0x2df   : > { %1886 = dma.done.wait (!%p1621_p1), %s1076_s12, 128  }
 0x2e0   : > { %1888 = vsyncadd (!%p1621_p1), %s1076_s12, 4294967168  ;;  %s2361_s16 = sld [smem:[#allocation19_spill]]  ;;  %s2362_s22 = sld [smem:[#allocation18_spill]] }
 0x2e1   : > { %s2363_s15 = sld [smem:[#allocation20_spill]]  ;;  %s2364_s13 = smov %s1895_s14 }
 0x2e6   : > { %p23_p6 = scmp.ge.s32.totalorder %s2361_s16, 10   ;;  %s2365_s14 = smov %s2362_s22 }
 0x2e8   :  { %25 = sbr.rel (!%p23_p6) target bundleno = 8 (0x8), region = 123 }
 0x2ef   :  { %1081 = vsyncpa [#allocation4], 1 }
 0x2f0   :  { %1083 = vsyncpa [#allocation4 + $0x1], 1 }
 0x2f1   :  { %1084 = vsyncpa [#allocation7], 1 }
 0x2f2   :  { %1085 = vsyncpa [#allocation10], 1 }
 0x2f3   :  { %1086 = vsyncpa [#allocation5], 1 }
 0x2f4   :  { %1088 = vsyncpa [#allocation5 + $0x1], 1 }

</bundles_post_ra>
